<compile_context>
chip_gen: v5e
topology: v5e:2x2
jax: 0.10.0
libtpu: 0.0.40
codegen_flags: <defaults>
</compile_context>

<pallas_src>
import functools
import math

import jax
import jax.numpy as jnp
from jax.experimental import pallas as pl
from jax.experimental.pallas import tpu as pltpu


_INV_SQRT2 = 1.0 / math.sqrt(2.0)
_SQRT_2_OVER_PI = math.sqrt(2.0 / math.pi)


# ----------------------------- in-kernel activations -------------------------

def _erf_approx(x):
  # Abramowitz & Stegun 7.1.26, |abs err| <= 1.5e-7.  Only exp/mul/add/select.
  a1, a2, a3, a4, a5 = (0.254829592, -0.284496736, 1.421413741,
                        -1.453152027, 1.061405429)
  p = 0.3275911
  ax = jnp.abs(x)
  t = 1.0 / (1.0 + p * ax)
  poly = ((((a5 * t + a4) * t + a3) * t + a2) * t + a1) * t
  y = 1.0 - poly * jnp.exp(-ax * ax)
  return jnp.where(x >= 0.0, y, -y)


def _softplus_stable(x):
  return jnp.maximum(x, 0.0) + jnp.log1p(jnp.exp(-jnp.abs(x)))


def _apply_act(h, act):
  if act == "gelu":          # erf-based gelu (HF activations.gelu / torch)
    return 0.5 * h * (1.0 + _erf_approx(h * _INV_SQRT2))
  if act == "gelu_new":      # tanh approximation
    return 0.5 * h * (1.0 + jnp.tanh(_SQRT_2_OVER_PI * (h + 0.044715 * h * h * h)))
  if act == "relu":
    return jnp.maximum(h, 0.0)
  if act == "swish":
    return h * jax.nn.sigmoid(h)
  if act == "mish":
    return h * jnp.tanh(_softplus_stable(h))
  raise ValueError(f"unsupported hidden_act: {act}")


# --------------------------------- kernel -----------------------------------

def _transform_kernel(x_ref, w_ref, b_ref, gamma_ref, beta_ref, o_ref,
                      *, act, ln_eps):
  # (rows, H_in) @ (H_in, H_out) on the MXU, f32 accumulation.
  h = jnp.dot(x_ref[...], w_ref[...], preferred_element_type=jnp.float32)
  h = h + b_ref[...]                      # (1, H_out) broadcast, f32

  h = _apply_act(h, act)                  # f32 elementwise (VPU/EUP)

  # LayerNorm over the hidden axis (biased variance, like torch.nn.LayerNorm).
  mean = jnp.mean(h, axis=-1, keepdims=True)
  centered = h - mean
  var = jnp.mean(centered * centered, axis=-1, keepdims=True)
  normed = centered * jax.lax.rsqrt(var + ln_eps)

  o_ref[...] = (normed * gamma_ref[...] + beta_ref[...]).astype(o_ref.dtype)


# -------------------------------- wrapper ------------------------------------

def bert_prediction_head_transform(hidden_states, params, *,
                                   hidden_act="gelu", ln_eps=1e-12,
                                   block_rows=128,
                                   matmul_dtype=jnp.float32):
  """hidden_states: (..., H_in) f32.  params: w (H_in,H_out), b/gamma/beta (H_out,)."""
  *lead, h_in = hidden_states.shape
  h_out = params["w"].shape[1]
  n = math.prod(lead) if lead else 1

  x = hidden_states.reshape(n, h_in)

  # Row-tile the token axis; pad to a whole number of tiles (padded rows are
  # computed but discarded on the slice below -- LN eps keeps them finite).
  block_rows = max(8, int(block_rows))
  n_pad = pl.cdiv(n, block_rows) * block_rows
  if n_pad != n:
    x = jnp.pad(x, ((0, n_pad - n), (0, 0)))
  grid = (n_pad // block_rows,)

  # Matmul operands may be bf16 (MXU-native); bias / LN params stay f32.
  x = x.astype(matmul_dtype)
  w = params["w"].astype(matmul_dtype)
  b = params["b"].reshape(1, h_out).astype(jnp.float32)
  gamma = params["gamma"].reshape(1, h_out).astype(jnp.float32)
  beta = params["beta"].reshape(1, h_out).astype(jnp.float32)

  itemsize = jnp.dtype(matmul_dtype).itemsize
  cost = pl.CostEstimate(
      flops=2 * n_pad * h_in * h_out + 12 * n_pad * h_out,
      transcendentals=n_pad * h_out,            # one exp per element (gelu)
      bytes_accessed=(n_pad * h_in + h_in * h_out) * itemsize
                     + (n_pad * h_out + 3 * h_out) * 4,
  )

  kernel = functools.partial(_transform_kernel, act=hidden_act, ln_eps=ln_eps)

  out = pl.pallas_call(
      kernel,
      out_shape=jax.ShapeDtypeStruct((n_pad, h_out), jnp.float32),
      grid_spec=pltpu.PrefetchScalarGridSpec(
          num_scalar_prefetch=0,
          grid=grid,
          in_specs=[
              pl.BlockSpec((block_rows, h_in), lambda i: (i, 0)),   # x tile
              pl.BlockSpec((h_in, h_out), lambda i: (0, 0)),        # W (resident)
              pl.BlockSpec((1, h_out), lambda i: (0, 0)),           # b
              pl.BlockSpec((1, h_out), lambda i: (0, 0)),           # gamma
              pl.BlockSpec((1, h_out), lambda i: (0, 0)),           # beta
          ],
          out_specs=pl.BlockSpec((block_rows, h_out), lambda i: (i, 0)),
      ),
      compiler_params=pltpu.CompilerParams(
          dimension_semantics=("parallel",),
          vmem_limit_bytes=32 * 1024 * 1024,
      ),
      cost_estimate=cost,
  )(x, w, b, gamma, beta)

  out = out[:n]
  return out.reshape(*lead, h_out)


# ------------------------------ pure-JAX reference ---------------------------

def _reference_act(h, act):
  if act == "gelu":
    return jax.nn.gelu(h, approximate=False)           # exact erf-based
  if act == "gelu_new":
    return 0.5 * h * (1.0 + jnp.tanh(_SQRT_2_OVER_PI * (h + 0.044715 * h ** 3)))
  if act == "relu":
    return jax.nn.relu(h)
  if act == "swish":
    return jax.nn.silu(h)
  if act == "mish":
    return h * jnp.tanh(jax.nn.softplus(h))
  raise ValueError(act)


def bert_prediction_head_transform_reference(hidden_states, params, *,
                                             hidden_act="gelu", ln_eps=1e-12):
  h = hidden_states @ params["w"] + params["b"]
  h = _reference_act(h, hidden_act)
  mean = h.mean(-1, keepdims=True)
  var = ((h - mean) ** 2).mean(-1, keepdims=True)
  return (h - mean) / jnp.sqrt(var + ln_eps) * params["gamma"] + params["beta"]


# ----------------------------------- demo ------------------------------------

if __name__ == "__main__":
  # config.feature_encoder=True path: input_hidden = hidden_size + feature_seq_len
  B, S = 2, 8
  HIDDEN = 128
  FEAT_LEN = 64
  H_IN = HIDDEN + FEAT_LEN        # 192

  key = jax.random.PRNGKey(0)
  k_x, k_w, k_b = jax.random.split(key, 3)

  params = {
      "w": (0.02 * jax.random.normal(k_w, (H_IN, HIDDEN))).astype(jnp.float32),
      "b": (0.02 * jax.random.normal(k_b, (HIDDEN,))).astype(jnp.float32),
      "gamma": jnp.ones((HIDDEN,), jnp.float32),
      "beta": jnp.zeros((HIDDEN,), jnp.float32),
  }
  hidden_states = jax.random.normal(k_x, (B, S, H_IN), dtype=jnp.float32)

  ref = bert_prediction_head_transform_reference(hidden_states, params,
                                                 hidden_act="gelu")

  # f32 matmul path: tight numerical check against the exact-erf reference.
  out_f32 = bert_prediction_head_transform(hidden_states, params,
                                           hidden_act="gelu", block_rows=8,
                                           matmul_dtype=jnp.float32)
  out_f32 = jax.block_until_ready(out_f32)
  assert out_f32.shape == (B, S, HIDDEN)
  assert jnp.allclose(out_f32, ref, atol=1e-4, rtol=1e-4), "f32 kernel mismatch"

  # bf16 matmul operands (MXU-native), f32 accumulation + f32 epilogue:
  # loose tolerance only accounts for bf16 operand rounding.
  out_bf16 = bert_prediction_head_transform(hidden_states, params,
                                            hidden_act="gelu", block_rows=8,
                                            matmul_dtype=jnp.bfloat16)
  out_bf16 = jax.block_until_ready(out_bf16)
  assert jnp.allclose(out_bf16, ref, atol=1e-1, rtol=5e-2), "bf16 kernel mismatch"

  print("KERNEL_OK")
</pallas_src>

<mosaic_0001>
module attributes {stable_mosaic.version = 11 : i64} {
  func.func @_transform_kernel(%arg0: i32, %arg1: memref<8x192xf32, #tpu.memory_space<vmem>>, %arg2: memref<192x128xf32, #tpu.memory_space<vmem>>, %arg3: memref<1x128xf32, #tpu.memory_space<vmem>>, %arg4: memref<1x128xf32, #tpu.memory_space<vmem>>, %arg5: memref<1x128xf32, #tpu.memory_space<vmem>>, %arg6: memref<8x128xf32, #tpu.memory_space<vmem>>) attributes {dimension_semantics = [#tpu.dimension_semantics<parallel>], iteration_bounds = array<i64: 2>, scalar_prefetch = 0 : i64, scratch_operands = 0 : i64, tpu.core_type = #tpu.core_type<tc>, window_params = [{transform_indices = @transform_0, window_bounds = array<i64: 8, 192>}, {pipeline_mode = #tpu.pipeline_mode<synchronous>, transform_indices = @transform_1, window_bounds = array<i64: 192, 128>}, {pipeline_mode = #tpu.pipeline_mode<synchronous>, transform_indices = @transform_2, window_bounds = array<i64: 1, 128>}, {pipeline_mode = #tpu.pipeline_mode<synchronous>, transform_indices = @transform_3, window_bounds = array<i64: 1, 128>}, {pipeline_mode = #tpu.pipeline_mode<synchronous>, transform_indices = @transform_4, window_bounds = array<i64: 1, 128>}, {transform_indices = @transform_5, window_bounds = array<i64: 8, 128>}]} {
    %c0 = arith.constant 0 : index
    %c0_0 = arith.constant 0 : index
    %0 = vector.load %arg1[%c0, %c0_0] : memref<8x192xf32, #tpu.memory_space<vmem>>, vector<8x192xf32>
    %c0_1 = arith.constant 0 : index
    %c0_2 = arith.constant 0 : index
    %1 = vector.load %arg2[%c0_1, %c0_2] : memref<192x128xf32, #tpu.memory_space<vmem>>, vector<192x128xf32>
    %cst = arith.constant dense<0.000000e+00> : vector<8x128xf32>
    %2 = tpu.matmul %0, %1, %cst {dimension_numbers = #tpu.dot_dimension_numbers<[1], [0], [0], [1], [0, 0, 1, 1], [], []>} : vector<8x192xf32>, vector<192x128xf32>, vector<8x128xf32> -> vector<8x128xf32>
    %c0_3 = arith.constant 0 : index
    %c0_4 = arith.constant 0 : index
    %3 = vector.load %arg3[%c0_3, %c0_4] : memref<1x128xf32, #tpu.memory_space<vmem>>, vector<1x128xf32>
    %4 = vector.broadcast %3 : vector<1x128xf32> to vector<8x128xf32>
    %5 = arith.addf %2, %4 : vector<8x128xf32>
    %cst_5 = arith.constant 5.000000e-01 : f32
    %6 = vector.broadcast %cst_5 : f32 to vector<8x128xf32>
    %7 = arith.mulf %6, %5 : vector<8x128xf32>
    %cst_6 = arith.constant 0.707106769 : f32
    %8 = vector.broadcast %cst_6 : f32 to vector<8x128xf32>
    %9 = arith.mulf %5, %8 : vector<8x128xf32>
    %10 = math.absf %9 : vector<8x128xf32>
    %cst_7 = arith.constant 0.327591091 : f32
    %11 = vector.broadcast %cst_7 : f32 to vector<8x128xf32>
    %12 = arith.mulf %11, %10 : vector<8x128xf32>
    %cst_8 = arith.constant 1.000000e+00 : f32
    %13 = vector.broadcast %cst_8 : f32 to vector<8x128xf32>
    %14 = arith.addf %13, %12 : vector<8x128xf32>
    %cst_9 = arith.constant 1.000000e+00 : f32
    %15 = vector.broadcast %cst_9 : f32 to vector<8x128xf32>
    %16 = arith.divf %15, %14 : vector<8x128xf32>
    %cst_10 = arith.constant 1.06140542 : f32
    %17 = vector.broadcast %cst_10 : f32 to vector<8x128xf32>
    %18 = arith.mulf %17, %16 : vector<8x128xf32>
    %cst_11 = arith.constant -1.45315206 : f32
    %19 = vector.broadcast %cst_11 : f32 to vector<8x128xf32>
    %20 = arith.addf %18, %19 : vector<8x128xf32>
    %21 = arith.mulf %20, %16 : vector<8x128xf32>
    %cst_12 = arith.constant 1.42141378 : f32
    %22 = vector.broadcast %cst_12 : f32 to vector<8x128xf32>
    %23 = arith.addf %21, %22 : vector<8x128xf32>
    %24 = arith.mulf %23, %16 : vector<8x128xf32>
    %cst_13 = arith.constant -0.284496725 : f32
    %25 = vector.broadcast %cst_13 : f32 to vector<8x128xf32>
    %26 = arith.addf %24, %25 : vector<8x128xf32>
    %27 = arith.mulf %26, %16 : vector<8x128xf32>
    %cst_14 = arith.constant 0.254829586 : f32
    %28 = vector.broadcast %cst_14 : f32 to vector<8x128xf32>
    %29 = arith.addf %27, %28 : vector<8x128xf32>
    %30 = arith.mulf %29, %16 : vector<8x128xf32>
    %cst_15 = arith.constant 0.000000e+00 : f32
    %31 = vector.broadcast %cst_15 : f32 to vector<8x128xf32>
    %32 = arith.subf %31, %10 : vector<8x128xf32>
    %33 = arith.mulf %32, %10 : vector<8x128xf32>
    %34 = math.exp %33 : vector<8x128xf32>
    %35 = arith.mulf %30, %34 : vector<8x128xf32>
    %cst_16 = arith.constant 1.000000e+00 : f32
    %36 = vector.broadcast %cst_16 : f32 to vector<8x128xf32>
    %37 = arith.subf %36, %35 : vector<8x128xf32>
    %cst_17 = arith.constant 0.000000e+00 : f32
    %38 = vector.broadcast %cst_17 : f32 to vector<8x128xf32>
    %39 = arith.cmpf oge, %9, %38 : vector<8x128xf32>
    %cst_18 = arith.constant 0.000000e+00 : f32
    %40 = vector.broadcast %cst_18 : f32 to vector<8x128xf32>
    %41 = arith.subf %40, %37 : vector<8x128xf32>
    %42 = arith.select %39, %37, %41 : vector<8x128xi1>, vector<8x128xf32>
    %cst_19 = arith.constant 1.000000e+00 : f32
    %43 = vector.broadcast %cst_19 : f32 to vector<8x128xf32>
    %44 = arith.addf %43, %42 : vector<8x128xf32>
    %45 = arith.mulf %7, %44 : vector<8x128xf32>
    %cst_20 = arith.constant dense<0.000000e+00> : vector<8xf32>
    %46 = vector.multi_reduction <add>, %45, %cst_20 [1] : vector<8x128xf32> to vector<8xf32>
    %47 = vector.shape_cast %46 : vector<8xf32> to vector<8x1xf32>
    %cst_21 = arith.constant 1.280000e+02 : f32
    %48 = vector.broadcast %cst_21 : f32 to vector<8x1xf32>
    %49 = arith.divf %47, %48 : vector<8x1xf32>
    %50 = vector.broadcast %49 : vector<8x1xf32> to vector<8x128xf32>
    %51 = arith.subf %45, %50 : vector<8x128xf32>
    %52 = arith.mulf %51, %51 : vector<8x128xf32>
    %cst_22 = arith.constant dense<0.000000e+00> : vector<8xf32>
    %53 = vector.multi_reduction <add>, %52, %cst_22 [1] : vector<8x128xf32> to vector<8xf32>
    %54 = vector.shape_cast %53 : vector<8xf32> to vector<8x1xf32>
    %cst_23 = arith.constant 1.280000e+02 : f32
    %55 = vector.broadcast %cst_23 : f32 to vector<8x1xf32>
    %56 = arith.divf %54, %55 : vector<8x1xf32>
    %cst_24 = arith.constant 9.99999996E-13 : f32
    %57 = vector.broadcast %cst_24 : f32 to vector<8x1xf32>
    %58 = arith.addf %56, %57 : vector<8x1xf32>
    %59 = math.rsqrt %58 : vector<8x1xf32>
    %60 = vector.broadcast %59 : vector<8x1xf32> to vector<8x128xf32>
    %61 = arith.mulf %51, %60 : vector<8x128xf32>
    %c0_25 = arith.constant 0 : index
    %c0_26 = arith.constant 0 : index
    %62 = vector.load %arg4[%c0_25, %c0_26] : memref<1x128xf32, #tpu.memory_space<vmem>>, vector<1x128xf32>
    %63 = vector.broadcast %62 : vector<1x128xf32> to vector<8x128xf32>
    %64 = arith.mulf %61, %63 : vector<8x128xf32>
    %c0_27 = arith.constant 0 : index
    %c0_28 = arith.constant 0 : index
    %65 = vector.load %arg5[%c0_27, %c0_28] : memref<1x128xf32, #tpu.memory_space<vmem>>, vector<1x128xf32>
    %66 = vector.broadcast %65 : vector<1x128xf32> to vector<8x128xf32>
    %67 = arith.addf %64, %66 : vector<8x128xf32>
    %c0_29 = arith.constant 0 : index
    %c0_30 = arith.constant 0 : index
    %68 = vector.load %arg6[%c0_29, %c0_30] : memref<8x128xf32, #tpu.memory_space<vmem>>, vector<8x128xf32>
    tpu.vector_store %arg6[%c0_29, %c0_30], %67 {strides = array<i32>} : memref<8x128xf32, #tpu.memory_space<vmem>>, vector<8x128xf32>,
    return
  }
  func.func @transform_0(%arg0: i32) -> (i32, i32) {
    %c0_i32 = arith.constant 0 : i32
    %c0_i32_0 = arith.constant 0 : i32
    return %arg0, %c0_i32 : i32, i32
  }
  func.func @transform_1(%arg0: i32) -> (i32, i32) {
    %c0_i32 = arith.constant 0 : i32
    %c0_i32_0 = arith.constant 0 : i32
    %c0_i32_1 = arith.constant 0 : i32
    return %c0_i32, %c0_i32_0 : i32, i32
  }
  func.func @transform_2(%arg0: i32) -> (i32, i32) {
    %c0_i32 = arith.constant 0 : i32
    %c0_i32_0 = arith.constant 0 : i32
    %c0_i32_1 = arith.constant 0 : i32
    return %c0_i32, %c0_i32_0 : i32, i32
  }
  func.func @transform_3(%arg0: i32) -> (i32, i32) {
    %c0_i32 = arith.constant 0 : i32
    %c0_i32_0 = arith.constant 0 : i32
    %c0_i32_1 = arith.constant 0 : i32
    return %c0_i32, %c0_i32_0 : i32, i32
  }
  func.func @transform_4(%arg0: i32) -> (i32, i32) {
    %c0_i32 = arith.constant 0 : i32
    %c0_i32_0 = arith.constant 0 : i32
    %c0_i32_1 = arith.constant 0 : i32
    return %c0_i32, %c0_i32_0 : i32, i32
  }
  func.func @transform_5(%arg0: i32) -> (i32, i32) {
    %c0_i32 = arith.constant 0 : i32
    %c0_i32_0 = arith.constant 0 : i32
    return %arg0, %c0_i32 : i32, i32
  }
}

</mosaic_0001>

<bundles_post_ra>
// kernel: tpu_custom_call.1
= control target key start
LH: loop header
LB: loop body
LE: loop exit
PB: predicated region body
PF: predicated region fallthrough
CT: control target
= control target key end

     0   :  { %10 = vsyncpa [#allocation3], 0  ;;  %s912_s0 = inlined_call_operand.hbm [shape: f32[16,192], index: 0, kind: input, shape index: {}]   ;;  %s913_s1 = inlined_call_operand.hbm [shape: f32[192,128], index: 1, kind: input, shape index: {}]   ;;  %s914_s2 = inlined_call_operand.vmem [shape: f32[1,128], index: 2, kind: input, shape index: {}]   ;;  %s915_s3 = inlined_call_operand.vmem [shape: f32[1,128], index: 3, kind: input, shape index: {}]   ;;  %s916_s4 = inlined_call_operand.vmem [shape: f32[1,128], index: 4, kind: input, shape index: {}]   ;;  %s917_s5 = inlined_call_operand.hbm [shape: f32[16,128], index: 5, kind: output, shape index: {}]  }
   0x1   :  { %12 = vsyncpa [#allocation3 + $0x1], 0 }
   0x2   :  { %13 = vsyncpa [#allocation6], 0 }
   0x3   :  { %14 = vsyncpa [#allocation4], 0 }
   0x4   :  { %16 = vsyncpa [#allocation4 + $0x1], 0  ;;  %s762_s18 = smov 0   ;;  %s764_s19 = smov 0  }
   0x5   :  { %s766_s20 = smov 0   ;;  %s768_s21 = smov 0  }
   0x6 LB: > { %s174_s24 = sshll.u32 %s913_s1, 4  ;;  %s786_s25 = sadd.s32 4294967295, %s726_s21   ;;  %s726_s21 = sphi %s768_s21, %s927_s21   ;;  %s722_s20 = sphi %s766_s20, %s926_s20   ;;  %s718_s19 = sphi %s764_s19, %s925_s19   ;;  %s714_s18 = sphi %s762_s18, %s924_s18   ;;  %s175_s24 = int_to_ptr.hbm [resolvable:$true] %s174_s24 }
   0x7   : > { %p509_p0 = scmp.ge.s32.totalorder %s726_s21, 1  ;;  %p43_p1 = scmp.eq.s32.totalorder %s786_s25, 0 }
   0x8   : > { %p163_p2 = scmp.lt.s32.totalorder %s726_s21, 3  ;;  %s728_s27 = smov [#allocation5]  }
   0x9   : > { %s176_s28 = sshll.u32 %s728_s27, 4  ;;  %s729_s29 = smov 128   ;;  %s177_s28 = int_to_ptr.vmem [resolvable:$true] %s176_s28 }
   0xa   : > { %p791_p3 = pnand %p509_p0, %p163_p2  ;;  %s730_s30 = smov 8  }
   0xb   : > { %s508_s6 = sadd.s32 4294967294, %s726_s21   ;;  %s802_s7 = sadd.s32 1, %s726_s21  }
   0xc   : > { %p533_p4 = pneg %p791_p3  ;;  %s29_s8 = sadd.s32 1, %s722_s20 }
   0xd   : > { %s26_s9 = ssub.s32 %s726_s21, %s802_s7  ;;  %p36_p7 = scmp.ne.s32.totalorder %s722_s20, %s718_s19 }
   0xe   : > { %p534_p6 = pnand %p533_p4, %p43_p1  ;;  %p27_p8 = scmp.eq.s32.totalorder %s26_s9, 0 }
   0xf   : > { %p37_p9 = scmp.eq.s32.totalorder %s726_s21, 0  ;;  %p42_p10 = scmp.ne.s32.totalorder %s718_s19, %s714_s18 }
  0x10   : > { %536 = dma.hbm_to_vmem [thread:$0]  (!%p534_p6), %s175_s24, 3072, %s177_s28, [#allocation6], %s729_s29, %s729_s29, %s730_s30  }
  0x11   : > { %p150_p11 = scmp.eq.s32.totalorder %s786_s25, 1  ;;  %p818_p12 = por %p43_p1, %p42_p10 }
  0x12   : > { %s814_s10 = scalar_select %p27_p8, %s722_s20, %s29_s8  }
  0x13   : > { %p822_p13 = por %p150_p11, %p36_p7  ;;  %p156_p0 = scmp.eq.s32.totalorder %s508_s6, 1 }
  0x14   : > { %p38_p2 = por %p37_p9, %p36_p7  ;;  %s199_s13 = sand.u32 1, %s722_s20  }
  0x15   : > { %p827_p4 = por %p156_p0, %p42_p10  ;;  %p546_p6 = scmp.lt.s32.totalorder %s726_s21, 2 }
  0x16   : > { %s512_s15 = sshll.u32 %s199_s13, 4  ;;  %s524_s16 = sshll.u32 %s726_s21, 4 }
  0x17   : > { %s208_s23 = scalar_lea.hbm %s912_s0, %s524_s16  ;;  %s203_s27 = scalar_lea.vmem [#allocation2], %s512_s15 }
  0x18   : > { %s210_s24 = sshll.u32 %s208_s23, 4  ;;  %s212_s28 = sshll.u32 %s203_s27, 4  ;;  %s211_s24 = int_to_ptr.hbm [resolvable:$true] %s210_s24  ;;  %s213_s28 = int_to_ptr.vmem [resolvable:$true] %s212_s28 }
  0x19   : > { %p836_p8 = pnand %p546_p6, %p38_p2  ;;  %s200_s30 = scalar_lea.sflag [#allocation3], %s199_s13 }
  0x1a   : > { %s626_s6 = sshra.s32 %s211_s24, 4  ;;  %s633_s15 = scalar_lea.hbm %s912_s0, 32  ;;  %s627_s6 = int_to_ptr.hbm [resolvable:$true] %s626_s6 }
  0x1b   : > { %s628_s8 = scalar_lea.hbm %s627_s6, 16  ;;  %p630_p9 = pneg %p836_p8 }
  0x1c   : > { %p629_p7 = scmp.ne.s32.totalorder %s627_s6, %s628_s8  ;;  %p634_p0 = scmp.lt.s32.totalorder %s627_s6, %s912_s0 }
  0x1d   : > { %p635_p2 = scmp.lt.s32.totalorder %s633_s15, %s628_s8 }
  0x1e   : > { %p631_p10 = pnand %p630_p9, %p629_p7 }
  0x1f   : > { %p636_p6 = por %p635_p2, %p634_p0 }
  0x20   : > { %p632_p11 = pneg %p631_p10 }
  0x22   : > { %p637_p5 = pnand %p636_p6, %p632_p11 }
  0x24   : > { %640 = shalt.err (!%p637_p5)
}
  0x25   : > { %540 = dma.hbm_to_vmem [thread:$0]  (!%p836_p8), %s211_s24, 256, %s213_s28, %s200_s30  }
  0x26   : > { %221 = sbr.rel (%p791_p3) target bundleno = 531 (0x213), region = 40  ;;  %s853_s13 = sand.u32 (!%p791_p3), 1, %s718_s19  }
  0x27   : > { %s516_s23 = sshll.u32 (!%p791_p3), %s853_s13, 4  ;;  %s224_s27 = scalar_lea.sflag (!%p791_p3), [#allocation3], %s853_s13 }
  0x28   : > { %s857_s9 = scalar_lea.vmem (!%p791_p3), [#allocation2], %s516_s23 }
  0x2b   : > { %701 = dma.done.wait (%p818_p12), %s224_s27, 256  }
  0x2c   : > { %703 = vsyncadd (%p818_p12), %s224_s27, 4294967040 }
  0x2d   : > { %705 = dma.done.wait (%p43_p1), [#allocation6], 3072  }
  0x2e   : > { %707 = vsyncadd (%p43_p1), [#allocation6], 4294964224  ;;  %v277_v0 = vld [vmem:[#allocation5 + $0x78] sm:$0xff]  ;;  %v276_v1 = vld [vmem:[#allocation5 + $0x70] sm:$0xff]  ;;  %vm290_vm0 = vcmask 523264   ;;  %s518_s24 = sshll.u32 %s853_s13, 3 }
  0x2f   : > { %294 = vmatpush.msra.mxu0 %v277_v0  ;;  %v275_v2 = vld [vmem:[#allocation5 + $0x68] sm:$0xff]  ;;  %v285_v3 = vld [vmem:[#allocation5 + $0xb8] sm:$0xff]  ;;  %v274_v4 = vld [vmem:[#allocation5 + $0x60] sm:$0xff]  ;;  %s521_s28 = sshll.u32 %s786_s25, 3  ;;  %s259_s25 = scalar_lea.vmem [#allocation7], %s518_s24 }
  0x30   : > { %322 = vmatpush.msra.mxu1 %v285_v3  ;;  %v284_v5 = vld [vmem:[#allocation5 + $0xb0] sm:$0xff]  ;;  %v283_v6 = vld [vmem:[#allocation5 + $0xa8] sm:$0xff]  ;;  %v273_v7 = vld [vmem:[#allocation5 + $0x58] sm:$0xff]  ;;  %s423_s16 = scalar_lea.hbm %s917_s5, %s521_s28  ;;  %s425_s22 = sshll.u32 %s259_s25, 4  ;;  %s426_s22 = int_to_ptr.vmem [resolvable:$true] %s425_s22 }
  0x31   : > { %295 = vmatpush.msra.mxu0 %v276_v1  ;;  %v282_v8 = vld [vmem:[#allocation5 + $0xa0] sm:$0xff]  ;;  %v272_v9 = vld [vmem:[#allocation5 + $0x50] sm:$0xff]  ;;  %v281_v10 = vld [vmem:[#allocation5 + $0x98] sm:$0xff]  ;;  %v731_v1 = vmov 128.0   ;;  %s427_s23 = sshll.u32 %s423_s16, 4  ;;  %s413_s27 = scalar_lea.sflag [#allocation4], %s853_s13  ;;  %s428_s23 = int_to_ptr.hbm [resolvable:$true] %s427_s23 }
  0x32   : > { %323 = vmatpush.msra.mxu1 %v284_v5  ;;  %v271_v11 = vld [vmem:[#allocation5 + $0x48] sm:$0xff]  ;;  %v280_v12 = vld [vmem:[#allocation5 + $0x90] sm:$0xff]  ;;  %v270_v13 = vld [vmem:[#allocation5 + $0x40] sm:$0xff]  ;;  %s676_s29 = scalar_lea.hbm %s917_s5, 16 }
  0x33   : > { %296 = vmatpush.msra.mxu0 %v275_v2  ;;  %v279_v14 = vld [vmem:[#allocation5 + $0x88] sm:$0xff]  ;;  %v269_v15 = vld [vmem:[#allocation5 + $0x38] sm:$0xff]  ;;  %v278_v16 = vld [vmem:[#allocation5 + $0x80] sm:$0xff] }
  0x34   : > { %324 = vmatpush.msra.mxu1 %v283_v6  ;;  %v268_v17 = vld [vmem:[#allocation5 + $0x30] sm:$0xff]  ;;  %v261_v18 = vld [vmem:[%s857_s9 + $0x8] sm:$0xff]  ;;  %v266_v20 = vld [vmem:[#allocation5 + $0x20] sm:$0xff] }
  0x35   : > { %297 = vmatpush.msra.mxu0 %v274_v4  ;;  %v267_v19 = vld [vmem:[#allocation5 + $0x28] sm:$0xff]  ;;  %v265_v21 = vld [vmem:[#allocation5 + $0x18] sm:$0xff]  ;;  %v264_v22 = vld [vmem:[#allocation5 + $0x10] sm:$0xff] }
  0x36   : > { %325 = vmatpush.msra.mxu1 %v282_v8  ;;  %v263_v23 = vld [vmem:[#allocation5 + $0x8] sm:$0xff]  ;;  %v262_v24 = vld [vmem:[#allocation5] sm:$0xff] }
  0x37   : > { %298 = vmatpush.msra.mxu0 %v273_v7  ;;  %v260_v25 = vld [vmem:[%s857_s9] sm:$0xff]  ;;  %s670_s9 = sshra.s32 %s428_s23, 4  ;;  %s671_s9 = int_to_ptr.hbm [resolvable:$true] %s670_s9 }
  0x38   : > { %326 = vmatpush.msra.mxu1 %v281_v10  ;;  %v585_v26 = vld [vmem:[%s914_s2] ss:$0 sm:$0xff]  ;;  %s672_s26 = scalar_lea.hbm %s671_s9, 8  ;;  %p677_p12 = scmp.lt.s32.totalorder %s671_s9, %s917_s5 }
  0x39   : > { %299 = vmatpush.msra.mxu0 %v272_v9  ;;  %p673_p1 = scmp.ne.s32.totalorder %s671_s9, %s672_s26  ;;  %p678_p8 = scmp.lt.s32.totalorder %s676_s29, %s672_s26 }
  0x3a   : > { %327 = vmatpush.msra.mxu1 %v280_v12 }
  0x3b   : > { %300 = vmatpush.msra.mxu0 %v271_v11  ;;  %p674_p3 = pnand %p673_p1, %p822_p13  ;;  %p679_p7 = por %p678_p8, %p677_p12 }
  0x3c   : > { %328 = vmatpush.msra.mxu1 %v279_v14 }
  0x3d   : > { %301 = vmatpush.msra.mxu0 %v270_v13  ;;  %p675_p5 = pneg %p674_p3 }
  0x3e   : > { %329 = vmatpush.msra.mxu1 %v278_v16 }
  0x3f   : > { %302 = vmatpush.msra.mxu0 %v269_v15  ;;  %519 = vmatmul.msk.f32.vlgmr.msra.gmra.mxu1 %vm290_vm0, %v261_v18  ;;  %p680_p9 = pnand %p679_p7, %p675_p5 }
  0x41   : > { %303 = vmatpush.msra.mxu0 %v268_v17 }
  0x43   : > { %304 = vmatpush.msra.mxu0 %v267_v19 }
  0x45   : > { %305 = vmatpush.msra.mxu0 %v266_v20 }
  0x47   : > { %306 = vmatpush.msra.mxu0 %v265_v21  ;;  %v586_v21 = vld [vmem:[%s915_s3] ss:$0 sm:$0xff] }
  0x49   : > { %307 = vmatpush.msra.mxu0 %v264_v22 }
  0x4b   : > { %308 = vmatpush.msra.mxu0 %v263_v23 }
  0x4d   : > { %309 = vmatpush.msra.mxu0 %v262_v24  ;;  %v587_v24 = vld [vmem:[%s916_s4] ss:$0 sm:$0xff] }
  0x4e   : > { %310 = vmatmul.f32.vlgmr.msra.gmra.mxu0 %v260_v25 }
  0xbc   : > { %v331_v28 = vpop.f32.mrf.mxu1 }
  0xcb   : > { %v311_v27 = vpop.f32.mrf.mxu0 }
  0xcc   : > { %v312_v29 = vadd.f32 %v585_v26, %v311_v27 }
  0xce   : > { %v332_v30 = vadd.f32 %v331_v28, %v312_v29 }
  0xd0   : > { %v335_v31 = vmul.f32 0.70710677, %v332_v30  ;;  %v334_v62 = vmul.f32 0.5, %v332_v30 }
  0xd2   : > { %v336_v32 = vand.u32 2147483647, %v335_v31  ;;  %vm369_vm5 = vcmp.ge.f32.partialorder %v335_v31, 0.0 }
  0xd4   : > { %v337_v33 = vmul.f32 0.3275911, %v336_v32  ;;  %v363_v44 = vsub.f32 0.0, %v336_v32 }
  0xd6   : > { %v338_v34 = vadd.f32 1.0, %v337_v33  ;;  %v364_v48 = vmul.f32 %v363_v44, %v336_v32 }
  0xd8   : > { %588 = vrcp.f32 %v338_v34  ;;  %v350_v38 = vand.u32 2147483648, %v338_v34  ;;  %v348_v40 = vand.u32 2147483647, %v338_v34  ;;  %vm344_vm2 = vweird.f32 %v338_v34 }
  0xd9   : > { %v365_v51 = vmul.f32 1.442695, %v364_v48 }
  0xda   : > { %v351_v42 = vor.u32 1.1754944e-38, %v350_v38  ;;  %vm349_vm4 = vcmp.eq.f32.partialorder %v348_v40, 8.507059e+37 }
  0xdb   : > { %590 = vpow2.f32 %v365_v51 }
  0xdc   : > { %592 = vrcp.f32 %v731_v1 }
  0xde   : > { %v589_v35 = vpop.eup %588 }
  0xdf   : > { %v340_v36 = vmul.f32 %v589_v35, %v338_v34  ;;  %vm345_vm1 = vweird.f32 %v589_v35 }
  0xe0   : > { %vm346_vm3 = vmor %vm344_vm2, %vm345_vm1 }
  0xe1   : > { %v341_v37 = vsub.f32 1.0, %v340_v36  ;;  %v591_v57 = vpop.eup %590 }
  0xe2   : > { %v593_v2 = vpop.eup %592 }
  0xe3   : > { %v342_v39 = vmul.f32 %v589_v35, %v341_v37  ;;  %v377_v3 = vmul.f32 128.0, %v593_v2  ;;  %vm381_vm6 = vweird.f32 %v593_v2 }
  0xe5   : > { %v343_v41 = vadd.f32 %v589_v35, %v342_v39  ;;  %v378_v4 = vsub.f32 1.0, %v377_v3 }
  0xe7   : > { %v347_v43 = vsel %vm346_vm3, %v589_v35, %v343_v41  ;;  %v379_v5 = vmul.f32 %v593_v2, %v378_v4 }
  0xe8   : > { %v352_v45 = vsel %vm349_vm4, %v351_v42, %v347_v43 }
  0xe9   : > { %v354_v46 = vmul.f32 1.0614054, %v352_v45  ;;  %v380_v6 = vadd.f32 %v593_v2, %v379_v5 }
  0xeb   : > { %v355_v47 = vadd.f32 -1.4531521, %v354_v46  ;;  %v382_v7 = vsel %vm381_vm6, %v593_v2, %v380_v6 }
  0xed   : > { %v356_v49 = vmul.f32 %v355_v47, %v352_v45 }
  0xef   : > { %v357_v50 = vadd.f32 1.4214138, %v356_v49 }
  0xf1   : > { %v358_v52 = vmul.f32 %v357_v50, %v352_v45 }
  0xf3   : > { %v359_v53 = vadd.f32 -0.28449672, %v358_v52 }
  0xf5   : > { %v360_v54 = vmul.f32 %v359_v53, %v352_v45 }
  0xf7   : > { %v361_v55 = vadd.f32 0.2548296, %v360_v54 }
  0xf9   : > { %v362_v56 = vmul.f32 %v361_v55, %v352_v45 }
  0xfb   : > { %v367_v58 = vmul.f32 %v591_v57, %v362_v56 }
  0xfd   : > { %v368_v59 = vsub.f32 1.0, %v367_v58 }
  0xff   : > { %v370_v60 = vsub.f32 0.0, %v368_v59 }
 0x101   : > { %v371_v61 = vsel %vm369_vm5, %v368_v59, %v370_v60 }
 0x102   : > { %v372_v63 = vadd.f32 1.0, %v371_v61 }
 0x104   : > { %v373_v0 = vmul.f32 %v372_v63, %v334_v62 }
 0x106   : > { %374 = vadd.xlane.f32.xlu0 %v373_v0 }
 0x179   : > { %v375_v8 = vpop.xlane.xlu0 %374 }
 0x17a   : > { %v383_v9 = vmul.f32 %v382_v7, %v375_v8 }
 0x17c   : > { %v384_v10 = vsub.f32 %v373_v0, %v383_v9 }
 0x17e   : > { %v385_v11 = vmul.f32 %v384_v10, %v384_v10 }
 0x180   : > { %386 = vadd.xlane.f32.xlu0 %v385_v11 }
 0x1f3   : > { %v387_v12 = vpop.xlane.xlu0 %386 }
 0x1f4   : > { %v388_v13 = vmul.f32 %v387_v12, %v382_v7 }
 0x1f6   : > { %v389_v14 = vadd.f32 1e-12, %v388_v13 }
 0x1f8   : > { %594 = vrsqrt.f32 %v389_v14  ;;  %vm396_vm8 = vweird.f32 %v389_v14 }
 0x1fe   : > { %v595_v15 = vpop.eup %594 }
 0x1ff   : > { %v391_v16 = vmul.f32 %v595_v15, %v389_v14  ;;  %vm397_vm7 = vweird.f32 %v595_v15 }
 0x200   : > { %vm398_vm9 = vmor %vm396_vm8, %vm397_vm7 }
 0x201   : > { %v392_v17 = vmul.f32 %v595_v15, %v391_v16 }
 0x203   : > { %v393_v18 = vmul.f32 0.5, %v392_v17 }
 0x205   : > { %v394_v19 = vsub.f32 1.5, %v393_v18 }
 0x207   : > { %v395_v20 = vmul.f32 %v595_v15, %v394_v19 }
 0x209   : > { %v399_v22 = vsel %vm398_vm9, %v595_v15, %v395_v20 }
 0x20a   : > { %v400_v23 = vmul.f32 %v399_v22, %v384_v10 }
 0x20c   : > { %v405_v25 = vmul.f32 %v586_v21, %v400_v23 }
 0x20e   : > { %v410_v26 = vadd.f32 %v587_v24, %v405_v25 }
 0x210   : > { %411 = vst [vmem:[%s259_s25] sm:$0xff] %v410_v26 }
 0x211   : > { %683 = shalt.err (!%p680_p9)
}
 0x212   : > { %531 = dma.vmem_to_hbm [thread:$0]  (%p822_p13), %s426_s22, 128, %s428_s23, %s413_s27  }
 0x213 PF: > { %s439_s13 = sand.u32 1, %s714_s18   ;;  %p923_p10 = scmp.ge.s32.totalorder %s726_s21, 2 }
 0x214   : > { %s440_s6 = scalar_lea.sflag [#allocation4], %s439_s13 }
 0x215   : > { %p542_p11 = pnand %p923_p10, %p827_p4 }
 0x217   : > { %p543_p0 = pneg %p542_p11 }
 0x219   : > { %709 = dma.done.wait (%p543_p0), %s440_s6, 128  }
 0x21a   : > { %711 = vsyncadd (%p543_p0), %s440_s6, 4294967168  ;;  %p19_p2 = scmp.ge.s32.totalorder %s802_s7, 4   ;;  %s924_s18 = smov %s718_s19 }
 0x21b   : > { %s925_s19 = smov %s722_s20  ;;  %s926_s20 = smov %s814_s10 }
 0x21c   : > { %s927_s21 = smov %s802_s7  ;;  %21 = sbr.rel (!%p19_p2) target bundleno = 6 (0x6), region = 89 }
 0x221   :  { %446 = vsyncpa [#allocation3], 1 }
 0x222   :  { %448 = vsyncpa [#allocation3 + $0x1], 1 }
 0x223   :  { %449 = vsyncpa [#allocation6], 1 }
 0x224   :  { %450 = vsyncpa [#allocation4], 1 }
 0x225   :  { %452 = vsyncpa [#allocation4 + $0x1], 1 }

</bundles_post_ra>
